<compile_context>
chip_gen: v5e
topology: v5e:2x2
jax: 0.10.0
libtpu: 0.0.40
codegen_flags: <defaults>
</compile_context>

<pallas_src>
import functools

import jax
import jax.numpy as jnp
from jax.experimental import pallas as pl
from jax.experimental.pallas import tpu as pltpu

EPS = 1e-5


# ---------------------------------------------------------------------------
# Kernel
# ---------------------------------------------------------------------------
def metacaru_kernel(img_ref, imgt_ref, meta_ref, w_i_ref, w_m_ref, gb_ref, out_ref):
    """One feature tile of width TN.

    img_ref : (B, IMG)      full image features (K side of the matmul)
    imgt_ref: (B, TN)       image feature tile for the element-wise update
    meta_ref: (B, META)     full metadata features
    w_i_ref : (IMG, 2*TN)   [W_fi_tile | W_gi_tile]   (no bias — cancelled by BN)
    w_m_ref : (META, 2*TN)  [W_fm_tile | W_gm_tile]
    gb_ref  : (8, 2*TN)     rows: [g_i, bt_i, g_m, bt_m, 0, 0, 0, 0]
    out_ref : (B, TN)
    """
    batch = img_ref.shape[0]
    tn = out_ref.shape[1]
    inv_b = 1.0 / batch

    img = img_ref[...]
    meta = meta_ref[...]

    # Two fused MXU matmuls (instead of four narrow ones).
    y_i = jnp.dot(img, w_i_ref[...], preferred_element_type=jnp.float32)   # (B, 2*TN)
    y_m = jnp.dot(meta, w_m_ref[...], preferred_element_type=jnp.float32)  # (B, 2*TN)

    # One-pass BatchNorm1d (training mode, biased variance) with folded
    # scale/shift.  Linear biases omitted: exactly cancelled by mean subtraction.
    def bn(y, gamma, beta):
        s = jnp.sum(y, axis=0, keepdims=True)
        ss = jnp.sum(y * y, axis=0, keepdims=True)
        mean = s * inv_b
        var = ss * inv_b - mean * mean
        scale = gamma * jax.lax.rsqrt(var + EPS)
        shift = beta - mean * scale
        return y * scale + shift

    yi = bn(y_i, gb_ref[0:1, :], gb_ref[1:2, :])   # [:, :tn] = fi, [:, tn:] = gi
    ym = bn(y_m, gb_ref[2:3, :], gb_ref[3:4, :])   # [:, :tn] = fm, [:, tn:] = gm

    fi = yi[:, :tn]
    gi = yi[:, tn:]
    fm = ym[:, :tn]
    gm = ym[:, tn:]

    n = jnp.tanh(fi + fm)
    z = jax.nn.sigmoid(gm + gi)
    l = jax.nn.sigmoid(fm) * z

    img_t = imgt_ref[...]
    out_ref[...] = (1.0 - l) * img_t + l * n


# ---------------------------------------------------------------------------
# Host-side packing helpers + wrapper
# ---------------------------------------------------------------------------
def _interleave_tiles(a, b, tn):
    """Pack a, b (..., D) into (..., 2*D) as [a_t0|b_t0|a_t1|b_t1|...] per TN tile."""
    *lead, d = a.shape
    nt = d // tn
    a_r = a.reshape(*lead, nt, 1, tn)
    b_r = b.reshape(*lead, nt, 1, tn)
    return jnp.concatenate([a_r, b_r], axis=-2).reshape(*lead, 2 * d)


def _pick_tile(img_dim):
    if img_dim % 128 == 0:
        for cand in (256, 128):            # 256 keeps double-buffered slabs well
            if img_dim % cand == 0:        # inside the v7x 64 MiB VMEM for big IMG
                return cand
    return img_dim                         # small / unaligned: single full tile


@functools.partial(jax.jit, static_argnames=("tn",))
def metacaru_forward(img, meta, params, tn=None):
    """img: (B, IMG) f32, meta: (B, META) f32, params: dict of weights."""
    B, IMG = img.shape
    META = meta.shape[1]

    if tn is None:
        tn = _pick_tile(IMG)
    assert IMG % tn == 0, "IMG must be divisible by the feature tile"
    nt = IMG // tn
    if nt > 1:
        assert tn % 128 == 0, "multi-tile path requires lane-aligned tiles"

    # Fused, per-tile-interleaved weights (biases dropped — exact under BN).
    w_i = _interleave_tiles(params["w_fi"], params["w_gi"], tn)   # (IMG, 2*IMG)
    w_m = _interleave_tiles(params["w_fm"], params["w_gm"], tn)   # (META, 2*IMG)

    # All gamma/beta vectors packed into one sublane-aligned (8, 2*IMG) operand.
    gb = jnp.concatenate(
        [
            _interleave_tiles(params["g_fi"], params["g_gi"], tn),
            _interleave_tiles(params["bt_fi"], params["bt_gi"], tn),
            _interleave_tiles(params["g_fm"], params["g_gm"], tn),
            _interleave_tiles(params["bt_fm"], params["bt_gm"], tn),
            jnp.zeros((4, 2 * IMG), jnp.float32),
        ],
        axis=0,
    )

    in_specs = [
        pl.BlockSpec((B, IMG), lambda j: (0, 0)),        # img (full, K side)
        pl.BlockSpec((B, tn), lambda j: (0, j)),         # img feature tile
        pl.BlockSpec((B, META), lambda j: (0, 0)),       # meta (full)
        pl.BlockSpec((IMG, 2 * tn), lambda j: (0, j)),   # fused img weights slab
        pl.BlockSpec((META, 2 * tn), lambda j: (0, j)),  # fused meta weights slab
        pl.BlockSpec((8, 2 * tn), lambda j: (0, j)),     # packed gamma/beta
    ]
    out_specs = pl.BlockSpec((B, tn), lambda j: (0, j))

    return pl.pallas_call(
        metacaru_kernel,
        out_shape=jax.ShapeDtypeStruct((B, IMG), jnp.float32),
        grid=(nt,),
        in_specs=in_specs,
        out_specs=out_specs,
        compiler_params=pltpu.CompilerParams(
            dimension_semantics=("parallel",),       # feature tiles are independent
            vmem_limit_bytes=48 * 1024 * 1024,       # headroom for large-IMG slabs
        ),
    )(img, img, meta, w_i, w_m, gb)


# ---------------------------------------------------------------------------
# Pure-JAX reference (keeps the Linear biases — validates that dropping them
# inside the kernel is exact under train-mode BatchNorm).
# ---------------------------------------------------------------------------
def metacaru_reference(img, meta, params):
    def lin_bn(x, w, b, g, bt):
        y = x @ w + b
        mean = jnp.mean(y, axis=0, keepdims=True)
        var = jnp.mean((y - mean) ** 2, axis=0, keepdims=True)
        return g * (y - mean) / jnp.sqrt(var + EPS) + bt

    fi = lin_bn(img, params["w_fi"], params["b_fi"], params["g_fi"], params["bt_fi"])
    gi = lin_bn(img, params["w_gi"], params["b_gi"], params["g_gi"], params["bt_gi"])
    fm = lin_bn(meta, params["w_fm"], params["b_fm"], params["g_fm"], params["bt_fm"])
    gm = lin_bn(meta, params["w_gm"], params["b_gm"], params["g_gm"], params["bt_gm"])
    p = fm
    n = jnp.tanh(fi + p)
    z = jax.nn.sigmoid(gm + gi)
    l = jax.nn.sigmoid(p) * z
    return (1.0 - l) * img + l * n


def init_params(key, img_dim, meta_dim):
    """Deterministic synthetic parameters (module shapes from __init__)."""
    ks = jax.random.split(key, 12)
    s_img = 1.0 / jnp.sqrt(img_dim)
    s_meta = 1.0 / jnp.sqrt(meta_dim)

    def u(k, shape, scale):
        return jax.random.uniform(k, shape, jnp.float32, -scale, scale)

    return {
        # Fi: Linear(img, img) + BN(img)
        "w_fi": u(ks[0], (img_dim, img_dim), s_img),
        "b_fi": u(ks[1], (1, img_dim), s_img),
        "g_fi": 1.0 + 0.1 * jax.random.normal(ks[8], (1, img_dim), jnp.float32),
        "bt_fi": 0.1 * jax.random.normal(ks[9], (1, img_dim), jnp.float32),
        # Gi: Linear(img, img) + BN(img)
        "w_gi": u(ks[2], (img_dim, img_dim), s_img),
        "b_gi": u(ks[3], (1, img_dim), s_img),
        "g_gi": jnp.ones((1, img_dim), jnp.float32),
        "bt_gi": jnp.zeros((1, img_dim), jnp.float32),
        # Fm: Linear(meta, img) + BN(img)   (densesparse=False branch)
        "w_fm": u(ks[4], (meta_dim, img_dim), s_meta),
        "b_fm": u(ks[5], (1, img_dim), s_meta),
        "g_fm": 1.0 + 0.1 * jax.random.normal(ks[10], (1, img_dim), jnp.float32),
        "bt_fm": 0.1 * jax.random.normal(ks[11], (1, img_dim), jnp.float32),
        # Gm: Linear(meta, img) + BN(img)
        "w_gm": u(ks[6], (meta_dim, img_dim), s_meta),
        "b_gm": u(ks[7], (1, img_dim), s_meta),
        "g_gm": jnp.ones((1, img_dim), jnp.float32),
        "bt_gm": jnp.zeros((1, img_dim), jnp.float32),
    }


if __name__ == "__main__":
    # Lane-dense shapes: IMG multiple of 128; TN=128 gives a 2-point "parallel"
    # feature grid (exercises tiling and both v7x TensorCores).  B>1 required
    # by BatchNorm training semantics.
    B, IMG, META = 8, 256, 32
    TN = 128

    key = jax.random.PRNGKey(0)
    k_img, k_meta, k_params = jax.random.split(key, 3)

    img = jax.random.normal(k_img, (B, IMG), jnp.float32)
    meta = jax.random.normal(k_meta, (B, META), jnp.float32)
    params = init_params(k_params, IMG, META)

    out = jax.block_until_ready(metacaru_forward(img, meta, params, tn=TN))
    ref = metacaru_reference(img, meta, params)

    assert out.shape == (B, IMG)
    assert jnp.allclose(out, ref, atol=1e-4, rtol=1e-4), "mismatch vs reference"

    print("KERNEL_OK")
</pallas_src>

<mosaic_0001>
module attributes {stable_mosaic.version = 11 : i64} {
  func.func @metacaru_kernel(%arg0: i32, %arg1: memref<8x256xf32, #tpu.memory_space<vmem>>, %arg2: memref<8x128xf32, #tpu.memory_space<vmem>>, %arg3: memref<8x32xf32, #tpu.memory_space<vmem>>, %arg4: memref<256x256xf32, #tpu.memory_space<vmem>>, %arg5: memref<32x256xf32, #tpu.memory_space<vmem>>, %arg6: memref<8x256xf32, #tpu.memory_space<vmem>>, %arg7: memref<8x128xf32, #tpu.memory_space<vmem>>) attributes {dimension_semantics = [#tpu.dimension_semantics<parallel>], iteration_bounds = array<i64: 2>, scalar_prefetch = 0 : i64, scratch_operands = 0 : i64, tpu.core_type = #tpu.core_type<tc>, window_params = [{pipeline_mode = #tpu.pipeline_mode<synchronous>, transform_indices = @transform_0, window_bounds = array<i64: 8, 256>}, {transform_indices = @transform_1, window_bounds = array<i64: 8, 128>}, {pipeline_mode = #tpu.pipeline_mode<synchronous>, transform_indices = @transform_2, window_bounds = array<i64: 8, 32>}, {transform_indices = @transform_3, window_bounds = array<i64: 256, 256>}, {transform_indices = @transform_4, window_bounds = array<i64: 32, 256>}, {transform_indices = @transform_5, window_bounds = array<i64: 8, 256>}, {transform_indices = @transform_6, window_bounds = array<i64: 8, 128>}]} {
    %c0 = arith.constant 0 : index
    %c0_0 = arith.constant 0 : index
    %0 = vector.load %arg1[%c0, %c0_0] : memref<8x256xf32, #tpu.memory_space<vmem>>, vector<8x256xf32>
    %c0_1 = arith.constant 0 : index
    %c0_2 = arith.constant 0 : index
    %1 = vector.load %arg3[%c0_1, %c0_2] : memref<8x32xf32, #tpu.memory_space<vmem>>, vector<8x32xf32>
    %c0_3 = arith.constant 0 : index
    %c0_4 = arith.constant 0 : index
    %2 = vector.load %arg4[%c0_3, %c0_4] : memref<256x256xf32, #tpu.memory_space<vmem>>, vector<256x256xf32>
    %cst = arith.constant dense<0.000000e+00> : vector<8x256xf32>
    %3 = tpu.matmul %0, %2, %cst {dimension_numbers = #tpu.dot_dimension_numbers<[1], [0], [0], [1], [0, 0, 1, 1], [], []>} : vector<8x256xf32>, vector<256x256xf32>, vector<8x256xf32> -> vector<8x256xf32>
    %c0_5 = arith.constant 0 : index
    %c0_6 = arith.constant 0 : index
    %4 = vector.load %arg5[%c0_5, %c0_6] : memref<32x256xf32, #tpu.memory_space<vmem>>, vector<32x256xf32>
    %cst_7 = arith.constant dense<0.000000e+00> : vector<8x256xf32>
    %5 = tpu.matmul %1, %4, %cst_7 {dimension_numbers = #tpu.dot_dimension_numbers<[1], [0], [0], [1], [0, 0, 1, 1], [], []>} : vector<8x32xf32>, vector<32x256xf32>, vector<8x256xf32> -> vector<8x256xf32>
    %c0_8 = arith.constant 0 : index
    %c0_9 = arith.constant 0 : index
    %6 = vector.load %arg6[%c0_8, %c0_9] : memref<8x256xf32, #tpu.memory_space<vmem>>, vector<1x256xf32>
    %c1 = arith.constant 1 : index
    %c0_10 = arith.constant 0 : index
    %7 = vector.load %arg6[%c1, %c0_10] : memref<8x256xf32, #tpu.memory_space<vmem>>, vector<1x256xf32>
    %cst_11 = arith.constant dense<0.000000e+00> : vector<256xf32>
    %8 = vector.multi_reduction <add>, %3, %cst_11 [0] : vector<8x256xf32> to vector<256xf32>
    %9 = vector.shape_cast %8 : vector<256xf32> to vector<1x256xf32>
    %10 = arith.mulf %3, %3 : vector<8x256xf32>
    %cst_12 = arith.constant dense<0.000000e+00> : vector<256xf32>
    %11 = vector.multi_reduction <add>, %10, %cst_12 [0] : vector<8x256xf32> to vector<256xf32>
    %12 = vector.shape_cast %11 : vector<256xf32> to vector<1x256xf32>
    %cst_13 = arith.constant 1.250000e-01 : f32
    %13 = vector.broadcast %cst_13 : f32 to vector<1x256xf32>
    %14 = arith.mulf %9, %13 : vector<1x256xf32>
    %cst_14 = arith.constant 1.250000e-01 : f32
    %15 = vector.broadcast %cst_14 : f32 to vector<1x256xf32>
    %16 = arith.mulf %12, %15 : vector<1x256xf32>
    %17 = arith.mulf %14, %14 : vector<1x256xf32>
    %18 = arith.subf %16, %17 : vector<1x256xf32>
    %cst_15 = arith.constant 9.99999974E-6 : f32
    %19 = vector.broadcast %cst_15 : f32 to vector<1x256xf32>
    %20 = arith.addf %18, %19 : vector<1x256xf32>
    %21 = math.rsqrt %20 : vector<1x256xf32>
    %22 = arith.mulf %6, %21 : vector<1x256xf32>
    %23 = arith.mulf %14, %22 : vector<1x256xf32>
    %24 = arith.subf %7, %23 : vector<1x256xf32>
    %25 = vector.broadcast %22 : vector<1x256xf32> to vector<8x256xf32>
    %26 = arith.mulf %3, %25 : vector<8x256xf32>
    %27 = vector.broadcast %24 : vector<1x256xf32> to vector<8x256xf32>
    %28 = arith.addf %26, %27 : vector<8x256xf32>
    %c2 = arith.constant 2 : index
    %c0_16 = arith.constant 0 : index
    %29 = vector.load %arg6[%c2, %c0_16] : memref<8x256xf32, #tpu.memory_space<vmem>>, vector<1x256xf32>
    %c3 = arith.constant 3 : index
    %c0_17 = arith.constant 0 : index
    %30 = vector.load %arg6[%c3, %c0_17] : memref<8x256xf32, #tpu.memory_space<vmem>>, vector<1x256xf32>
    %cst_18 = arith.constant dense<0.000000e+00> : vector<256xf32>
    %31 = vector.multi_reduction <add>, %5, %cst_18 [0] : vector<8x256xf32> to vector<256xf32>
    %32 = vector.shape_cast %31 : vector<256xf32> to vector<1x256xf32>
    %33 = arith.mulf %5, %5 : vector<8x256xf32>
    %cst_19 = arith.constant dense<0.000000e+00> : vector<256xf32>
    %34 = vector.multi_reduction <add>, %33, %cst_19 [0] : vector<8x256xf32> to vector<256xf32>
    %35 = vector.shape_cast %34 : vector<256xf32> to vector<1x256xf32>
    %cst_20 = arith.constant 1.250000e-01 : f32
    %36 = vector.broadcast %cst_20 : f32 to vector<1x256xf32>
    %37 = arith.mulf %32, %36 : vector<1x256xf32>
    %cst_21 = arith.constant 1.250000e-01 : f32
    %38 = vector.broadcast %cst_21 : f32 to vector<1x256xf32>
    %39 = arith.mulf %35, %38 : vector<1x256xf32>
    %40 = arith.mulf %37, %37 : vector<1x256xf32>
    %41 = arith.subf %39, %40 : vector<1x256xf32>
    %cst_22 = arith.constant 9.99999974E-6 : f32
    %42 = vector.broadcast %cst_22 : f32 to vector<1x256xf32>
    %43 = arith.addf %41, %42 : vector<1x256xf32>
    %44 = math.rsqrt %43 : vector<1x256xf32>
    %45 = arith.mulf %29, %44 : vector<1x256xf32>
    %46 = arith.mulf %37, %45 : vector<1x256xf32>
    %47 = arith.subf %30, %46 : vector<1x256xf32>
    %48 = vector.broadcast %45 : vector<1x256xf32> to vector<8x256xf32>
    %49 = arith.mulf %5, %48 : vector<8x256xf32>
    %50 = vector.broadcast %47 : vector<1x256xf32> to vector<8x256xf32>
    %51 = arith.addf %49, %50 : vector<8x256xf32>
    %52 = vector.extract_strided_slice %28 {offsets = [0, 0], sizes = [8, 128], strides = [1, 1]} : vector<8x256xf32> to vector<8x128xf32>
    %53 = vector.extract_strided_slice %28 {offsets = [0, 128], sizes = [8, 128], strides = [1, 1]} : vector<8x256xf32> to vector<8x128xf32>
    %54 = vector.extract_strided_slice %51 {offsets = [0, 0], sizes = [8, 128], strides = [1, 1]} : vector<8x256xf32> to vector<8x128xf32>
    %55 = vector.extract_strided_slice %51 {offsets = [0, 128], sizes = [8, 128], strides = [1, 1]} : vector<8x256xf32> to vector<8x128xf32>
    %56 = arith.addf %52, %54 : vector<8x128xf32>
    %57 = math.tanh %56 : vector<8x128xf32>
    %58 = arith.addf %55, %53 : vector<8x128xf32>
    %59 = arith.negf %58 : vector<8x128xf32>
    %60 = math.exp %59 : vector<8x128xf32>
    %cst_23 = arith.constant 1.000000e+00 : f32
    %61 = vector.broadcast %cst_23 : f32 to vector<8x128xf32>
    %62 = arith.addf %61, %60 : vector<8x128xf32>
    %63 = arith.divf %61, %62 : vector<8x128xf32>
    %64 = arith.negf %54 : vector<8x128xf32>
    %65 = math.exp %64 : vector<8x128xf32>
    %cst_24 = arith.constant 1.000000e+00 : f32
    %66 = vector.broadcast %cst_24 : f32 to vector<8x128xf32>
    %67 = arith.addf %66, %65 : vector<8x128xf32>
    %68 = arith.divf %66, %67 : vector<8x128xf32>
    %69 = arith.mulf %68, %63 : vector<8x128xf32>
    %c0_25 = arith.constant 0 : index
    %c0_26 = arith.constant 0 : index
    %70 = vector.load %arg2[%c0_25, %c0_26] : memref<8x128xf32, #tpu.memory_space<vmem>>, vector<8x128xf32>
    %cst_27 = arith.constant 1.000000e+00 : f32
    %71 = vector.broadcast %cst_27 : f32 to vector<8x128xf32>
    %72 = arith.subf %71, %69 : vector<8x128xf32>
    %73 = arith.mulf %72, %70 : vector<8x128xf32>
    %74 = arith.mulf %69, %57 : vector<8x128xf32>
    %75 = arith.addf %73, %74 : vector<8x128xf32>
    %c0_28 = arith.constant 0 : index
    %c0_29 = arith.constant 0 : index
    %76 = vector.load %arg7[%c0_28, %c0_29] : memref<8x128xf32, #tpu.memory_space<vmem>>, vector<8x128xf32>
    tpu.vector_store %arg7[%c0_28, %c0_29], %75 {strides = array<i32>} : memref<8x128xf32, #tpu.memory_space<vmem>>, vector<8x128xf32>,
    return
  }
  func.func @transform_0(%arg0: i32) -> (i32, i32) {
    %c0_i32 = arith.constant 0 : i32
    %c0_i32_0 = arith.constant 0 : i32
    %c0_i32_1 = arith.constant 0 : i32
    return %c0_i32, %c0_i32_0 : i32, i32
  }
  func.func @transform_1(%arg0: i32) -> (i32, i32) {
    %c0_i32 = arith.constant 0 : i32
    %c0_i32_0 = arith.constant 0 : i32
    return %c0_i32, %arg0 : i32, i32
  }
  func.func @transform_2(%arg0: i32) -> (i32, i32) {
    %c0_i32 = arith.constant 0 : i32
    %c0_i32_0 = arith.constant 0 : i32
    %c0_i32_1 = arith.constant 0 : i32
    return %c0_i32, %c0_i32_0 : i32, i32
  }
  func.func @transform_3(%arg0: i32) -> (i32, i32) {
    %c0_i32 = arith.constant 0 : i32
    %c0_i32_0 = arith.constant 0 : i32
    return %c0_i32, %arg0 : i32, i32
  }
  func.func @transform_4(%arg0: i32) -> (i32, i32) {
    %c0_i32 = arith.constant 0 : i32
    %c0_i32_0 = arith.constant 0 : i32
    return %c0_i32, %arg0 : i32, i32
  }
  func.func @transform_5(%arg0: i32) -> (i32, i32) {
    %c0_i32 = arith.constant 0 : i32
    %c0_i32_0 = arith.constant 0 : i32
    return %c0_i32, %arg0 : i32, i32
  }
  func.func @transform_6(%arg0: i32) -> (i32, i32) {
    %c0_i32 = arith.constant 0 : i32
    %c0_i32_0 = arith.constant 0 : i32
    return %c0_i32, %arg0 : i32, i32
  }
}

</mosaic_0001>

<bundles_post_ra>
// kernel: metacaru_forward.1
= control target key start
LH: loop header
LB: loop body
LE: loop exit
PB: predicated region body
PF: predicated region fallthrough
CT: control target
= control target key end

     0   :  { %11 = vsyncpa [#allocation5], 0  ;;  %s1616_s0 = inlined_call_operand.vmem [shape: f32[8,256], index: 0, kind: input, shape index: {}, may-alias: {0,1}]   ;;  %s1617_s1 = inlined_call_operand.vmem [shape: f32[8,256], index: 1, kind: input, shape index: {}, may-alias: {0,1}]   ;;  %s1618_s2 = inlined_call_operand.vmem [shape: f32[8,32], index: 2, kind: input, shape index: {}]   ;;  %s1619_s3 = inlined_call_operand.vmem [shape: f32[256,512], index: 3, kind: input, shape index: {}]   ;;  %s1620_s4 = inlined_call_operand.vmem [shape: f32[32,512], index: 4, kind: input, shape index: {}]   ;;  %s1621_s5 = inlined_call_operand.vmem [shape: f32[8,512], index: 5, kind: input, shape index: {}]   ;;  %s1622_s6 = inlined_call_operand.hbm [shape: f32[8,256], index: 6, kind: output, shape index: {}]  }
   0x1   :  { %13 = vsyncpa [#allocation5 + $0x1], 0  ;;  %s1222_s21 = smov 0   ;;  %s1224_s22 = smov 0  }
   0x2   :  { %s1226_s23 = smov 0   ;;  %s1228_s24 = smov 0  }
   0x3 LB: > { %s1243_s25 = sadd.s32 4294967295, %s1185_s24   ;;  %s1037_s26 = sadd.s32 4294967294, %s1185_s24   ;;  %s1185_s24 = sphi %s1228_s24, %s1631_s24   ;;  %s1181_s23 = sphi %s1226_s23, %s1630_s23   ;;  %s1177_s22 = sphi %s1224_s22, %s1629_s22   ;;  %s1173_s21 = sphi %s1222_s21, %s1628_s21  }
   0x4   : > { %s1247_s27 = sadd.s32 1, %s1185_s24   ;;  %s94_s28 = sadd.s32 1, %s1181_s23 }
   0x5   : > { %s91_s29 = ssub.s32 %s1185_s24, %s1247_s27  ;;  %p101_p0 = scmp.ne.s32.totalorder %s1181_s23, %s1177_s22 }
   0x6   : > { %p92_p1 = scmp.eq.s32.totalorder %s91_s29, 0  ;;  %p102_p2 = scmp.eq.s32.totalorder %s1185_s24, 0 }
   0x7   : > { %p183_p3 = scmp.eq.s32.totalorder %s1243_s25, 1  ;;  %p188_p4 = scmp.ne.s32.totalorder %s1177_s22, %s1173_s21 }
   0x8   : > { %s1259_s30 = scalar_select %p92_p1, %s1181_s23, %s94_s28  }
   0x9   : > { %p1261_p5 = por %p102_p2, %p101_p0  ;;  %p1265_p6 = por %p183_p3, %p101_p0 }
   0xa   : > { %p189_p7 = scmp.eq.s32.totalorder %s1037_s26, 1  ;;  %p1039_p9 = scmp.ge.s32.totalorder %s1185_s24, 2 }
   0xc   : > { %p1269_p8 = por %p189_p7, %p188_p4  ;;  %211 = sbr.rel (%p1039_p9) target bundleno = 97 (0x61), region = 24 }
  0x11   : > { %221 = sbr.rel (!%p1261_p5) target bundleno = 85 (0x55), region = 32  ;;  %s223_s10 = sand.u32 (%p1261_p5), 1, %s1181_s23  }
  0x12   : > { %s1064_s11 = sshll.u32 (%p1261_p5), %s1185_s24, 4  ;;  %s1040_s12 = sshll.u32 (%p1261_p5), %s223_s10, 9 }
  0x13   : > { %s1283_s15 = scalar_lea.vmem (%p1261_p5), %s1619_s3, %s1064_s11  ;;  %s1288_s16 = scalar_lea.vmem (%p1261_p5), [#allocation2], %s1040_s12 }
  0x14   : > { %v241_v0 = vld [vmem:[%s1283_s15] sm:$0xff] (%p1261_p5)  ;;  %v243_v1 = vld [vmem:[%s1283_s15 + $0x8] sm:$0xff] (%p1261_p5) }
  0x15   : > { %v245_v2 = vld [vmem:[%s1283_s15 + $0x20] sm:$0xff] (%p1261_p5)  ;;  %242 = vst [vmem:[%s1288_s16] sm:$0xff] (%p1261_p5), %v241_v0  ;;  %v247_v3 = vld [vmem:[%s1283_s15 + $0x28] sm:$0xff] (%p1261_p5) }
  0x16   : > { %244 = vst [vmem:[%s1288_s16 + $0x8] sm:$0xff] %v243_v1  ;;  %v249_v4 = vld [vmem:[%s1283_s15 + $0x40] sm:$0xff]  ;;  %v251_v5 = vld [vmem:[%s1283_s15 + $0x48] sm:$0xff] }
  0x17   : > { %246 = vst [vmem:[%s1288_s16 + $0x10] sm:$0xff] %v245_v2  ;;  %v253_v6 = vld [vmem:[%s1283_s15 + $0x60] sm:$0xff]  ;;  %v255_v7 = vld [vmem:[%s1283_s15 + $0x68] sm:$0xff] }
  0x18   : > { %248 = vst [vmem:[%s1288_s16 + $0x18] sm:$0xff] %v247_v3  ;;  %v257_v8 = vld [vmem:[%s1283_s15 + $0x80] sm:$0xff]  ;;  %v259_v9 = vld [vmem:[%s1283_s15 + $0x88] sm:$0xff] }
  0x19   : > { %250 = vst [vmem:[%s1288_s16 + $0x20] sm:$0xff] %v249_v4  ;;  %v261_v10 = vld [vmem:[%s1283_s15 + $0xa0] sm:$0xff]  ;;  %v263_v11 = vld [vmem:[%s1283_s15 + $0xa8] sm:$0xff] }
  0x1a   : > { %252 = vst [vmem:[%s1288_s16 + $0x28] sm:$0xff] %v251_v5  ;;  %v265_v12 = vld [vmem:[%s1283_s15 + $0xc0] sm:$0xff]  ;;  %v267_v13 = vld [vmem:[%s1283_s15 + $0xc8] sm:$0xff] }
  0x1b   : > { %254 = vst [vmem:[%s1288_s16 + $0x30] sm:$0xff] %v253_v6  ;;  %v269_v14 = vld [vmem:[%s1283_s15 + $0xe0] sm:$0xff]  ;;  %v271_v15 = vld [vmem:[%s1283_s15 + $0xe8] sm:$0xff] }
  0x1c   : > { %256 = vst [vmem:[%s1288_s16 + $0x38] sm:$0xff] %v255_v7  ;;  %v273_v16 = vld [vmem:[%s1283_s15 + $0x100] sm:$0xff]  ;;  %v275_v17 = vld [vmem:[%s1283_s15 + $0x108] sm:$0xff] }
  0x1d   : > { %258 = vst [vmem:[%s1288_s16 + $0x40] sm:$0xff] %v257_v8  ;;  %v277_v18 = vld [vmem:[%s1283_s15 + $0x120] sm:$0xff]  ;;  %v279_v19 = vld [vmem:[%s1283_s15 + $0x128] sm:$0xff] }
  0x1e   : > { %260 = vst [vmem:[%s1288_s16 + $0x48] sm:$0xff] %v259_v9  ;;  %v281_v20 = vld [vmem:[%s1283_s15 + $0x140] sm:$0xff]  ;;  %v283_v21 = vld [vmem:[%s1283_s15 + $0x148] sm:$0xff] }
  0x1f   : > { %262 = vst [vmem:[%s1288_s16 + $0x50] sm:$0xff] %v261_v10  ;;  %v285_v22 = vld [vmem:[%s1283_s15 + $0x160] sm:$0xff]  ;;  %v287_v23 = vld [vmem:[%s1283_s15 + $0x168] sm:$0xff] }
  0x20   : > { %264 = vst [vmem:[%s1288_s16 + $0x58] sm:$0xff] %v263_v11  ;;  %v289_v24 = vld [vmem:[%s1283_s15 + $0x180] sm:$0xff]  ;;  %v291_v25 = vld [vmem:[%s1283_s15 + $0x188] sm:$0xff] }
  0x21   : > { %266 = vst [vmem:[%s1288_s16 + $0x60] sm:$0xff] %v265_v12  ;;  %v293_v26 = vld [vmem:[%s1283_s15 + $0x1a0] sm:$0xff]  ;;  %v295_v27 = vld [vmem:[%s1283_s15 + $0x1a8] sm:$0xff] }
  0x22   : > { %268 = vst [vmem:[%s1288_s16 + $0x68] sm:$0xff] %v267_v13  ;;  %v297_v28 = vld [vmem:[%s1283_s15 + $0x1c0] sm:$0xff]  ;;  %v299_v29 = vld [vmem:[%s1283_s15 + $0x1c8] sm:$0xff] }
  0x23   : > { %270 = vst [vmem:[%s1288_s16 + $0x70] sm:$0xff] %v269_v14  ;;  %v301_v30 = vld [vmem:[%s1283_s15 + $0x1e0] sm:$0xff]  ;;  %v303_v31 = vld [vmem:[%s1283_s15 + $0x1e8] sm:$0xff] }
  0x24   : > { %272 = vst [vmem:[%s1288_s16 + $0x78] sm:$0xff] %v271_v15  ;;  %v305_v32 = vld [vmem:[%s1283_s15 + $0x200] sm:$0xff]  ;;  %v307_v33 = vld [vmem:[%s1283_s15 + $0x208] sm:$0xff] }
  0x25   : > { %274 = vst [vmem:[%s1288_s16 + $0x80] sm:$0xff] %v273_v16  ;;  %v309_v34 = vld [vmem:[%s1283_s15 + $0x220] sm:$0xff]  ;;  %v311_v35 = vld [vmem:[%s1283_s15 + $0x228] sm:$0xff] }
  0x26   : > { %276 = vst [vmem:[%s1288_s16 + $0x88] sm:$0xff] %v275_v17  ;;  %v313_v36 = vld [vmem:[%s1283_s15 + $0x240] sm:$0xff]  ;;  %v315_v37 = vld [vmem:[%s1283_s15 + $0x248] sm:$0xff] }
  0x27   : > { %278 = vst [vmem:[%s1288_s16 + $0x90] sm:$0xff] %v277_v18  ;;  %v317_v38 = vld [vmem:[%s1283_s15 + $0x260] sm:$0xff]  ;;  %v319_v39 = vld [vmem:[%s1283_s15 + $0x268] sm:$0xff] }
  0x28   : > { %280 = vst [vmem:[%s1288_s16 + $0x98] sm:$0xff] %v279_v19  ;;  %v321_v40 = vld [vmem:[%s1283_s15 + $0x280] sm:$0xff]  ;;  %v323_v41 = vld [vmem:[%s1283_s15 + $0x288] sm:$0xff] }
  0x29   : > { %282 = vst [vmem:[%s1288_s16 + $0xa0] sm:$0xff] %v281_v20  ;;  %v325_v42 = vld [vmem:[%s1283_s15 + $0x2a0] sm:$0xff]  ;;  %v327_v43 = vld [vmem:[%s1283_s15 + $0x2a8] sm:$0xff] }
  0x2a   : > { %284 = vst [vmem:[%s1288_s16 + $0xa8] sm:$0xff] %v283_v21  ;;  %v329_v44 = vld [vmem:[%s1283_s15 + $0x2c0] sm:$0xff]  ;;  %v331_v45 = vld [vmem:[%s1283_s15 + $0x2c8] sm:$0xff] }
  0x2b   : > { %286 = vst [vmem:[%s1288_s16 + $0xb0] sm:$0xff] %v285_v22  ;;  %v333_v46 = vld [vmem:[%s1283_s15 + $0x2e0] sm:$0xff]  ;;  %v335_v47 = vld [vmem:[%s1283_s15 + $0x2e8] sm:$0xff] }
  0x2c   : > { %288 = vst [vmem:[%s1288_s16 + $0xb8] sm:$0xff] %v287_v23  ;;  %v337_v48 = vld [vmem:[%s1283_s15 + $0x300] sm:$0xff]  ;;  %v339_v49 = vld [vmem:[%s1283_s15 + $0x308] sm:$0xff] }
  0x2d   : > { %290 = vst [vmem:[%s1288_s16 + $0xc0] sm:$0xff] %v289_v24  ;;  %v341_v50 = vld [vmem:[%s1283_s15 + $0x320] sm:$0xff]  ;;  %v343_v51 = vld [vmem:[%s1283_s15 + $0x328] sm:$0xff] }
  0x2e   : > { %292 = vst [vmem:[%s1288_s16 + $0xc8] sm:$0xff] %v291_v25  ;;  %v345_v52 = vld [vmem:[%s1283_s15 + $0x340] sm:$0xff]  ;;  %v347_v53 = vld [vmem:[%s1283_s15 + $0x348] sm:$0xff] }
  0x2f   : > { %294 = vst [vmem:[%s1288_s16 + $0xd0] sm:$0xff] %v293_v26  ;;  %v349_v54 = vld [vmem:[%s1283_s15 + $0x360] sm:$0xff]  ;;  %v351_v55 = vld [vmem:[%s1283_s15 + $0x368] sm:$0xff] }
  0x30   : > { %296 = vst [vmem:[%s1288_s16 + $0xd8] sm:$0xff] %v295_v27  ;;  %v353_v56 = vld [vmem:[%s1283_s15 + $0x380] sm:$0xff]  ;;  %v355_v57 = vld [vmem:[%s1283_s15 + $0x388] sm:$0xff] }
  0x31   : > { %298 = vst [vmem:[%s1288_s16 + $0xe0] sm:$0xff] %v297_v28  ;;  %v357_v58 = vld [vmem:[%s1283_s15 + $0x3a0] sm:$0xff]  ;;  %v359_v59 = vld [vmem:[%s1283_s15 + $0x3a8] sm:$0xff] }
  0x32   : > { %300 = vst [vmem:[%s1288_s16 + $0xe8] sm:$0xff] %v299_v29  ;;  %v361_v60 = vld [vmem:[%s1283_s15 + $0x3c0] sm:$0xff]  ;;  %v363_v61 = vld [vmem:[%s1283_s15 + $0x3c8] sm:$0xff] }
  0x33   : > { %302 = vst [vmem:[%s1288_s16 + $0xf0] sm:$0xff] %v301_v30  ;;  %v365_v62 = vld [vmem:[%s1283_s15 + $0x3e0] sm:$0xff]  ;;  %v367_v63 = vld [vmem:[%s1283_s15 + $0x3e8] sm:$0xff] }
  0x34   : > { %304 = vst [vmem:[%s1288_s16 + $0xf8] sm:$0xff] %v303_v31 }
  0x35   : > { %306 = vst [vmem:[%s1288_s16 + $0x100] sm:$0xff] %v305_v32 }
  0x36   : > { %308 = vst [vmem:[%s1288_s16 + $0x108] sm:$0xff] %v307_v33 }
  0x37   : > { %310 = vst [vmem:[%s1288_s16 + $0x110] sm:$0xff] %v309_v34 }
  0x38   : > { %312 = vst [vmem:[%s1288_s16 + $0x118] sm:$0xff] %v311_v35 }
  0x39   : > { %314 = vst [vmem:[%s1288_s16 + $0x120] sm:$0xff] %v313_v36 }
  0x3a   : > { %316 = vst [vmem:[%s1288_s16 + $0x128] sm:$0xff] %v315_v37 }
  0x3b   : > { %318 = vst [vmem:[%s1288_s16 + $0x130] sm:$0xff] %v317_v38 }
  0x3c   : > { %320 = vst [vmem:[%s1288_s16 + $0x138] sm:$0xff] %v319_v39 }
  0x3d   : > { %322 = vst [vmem:[%s1288_s16 + $0x140] sm:$0xff] %v321_v40 }
  0x3e   : > { %324 = vst [vmem:[%s1288_s16 + $0x148] sm:$0xff] %v323_v41 }
  0x3f   : > { %326 = vst [vmem:[%s1288_s16 + $0x150] sm:$0xff] %v325_v42 }
  0x40   : > { %328 = vst [vmem:[%s1288_s16 + $0x158] sm:$0xff] %v327_v43 }
  0x41   : > { %330 = vst [vmem:[%s1288_s16 + $0x160] sm:$0xff] %v329_v44 }
  0x42   : > { %332 = vst [vmem:[%s1288_s16 + $0x168] sm:$0xff] %v331_v45 }
  0x43   : > { %334 = vst [vmem:[%s1288_s16 + $0x170] sm:$0xff] %v333_v46 }
  0x44   : > { %336 = vst [vmem:[%s1288_s16 + $0x178] sm:$0xff] %v335_v47 }
  0x45   : > { %338 = vst [vmem:[%s1288_s16 + $0x180] sm:$0xff] %v337_v48 }
  0x46   : > { %340 = vst [vmem:[%s1288_s16 + $0x188] sm:$0xff] %v339_v49 }
  0x47   : > { %342 = vst [vmem:[%s1288_s16 + $0x190] sm:$0xff] %v341_v50 }
  0x48   : > { %344 = vst [vmem:[%s1288_s16 + $0x198] sm:$0xff] %v343_v51 }
  0x49   : > { %346 = vst [vmem:[%s1288_s16 + $0x1a0] sm:$0xff] %v345_v52 }
  0x4a   : > { %348 = vst [vmem:[%s1288_s16 + $0x1a8] sm:$0xff] %v347_v53 }
  0x4b   : > { %350 = vst [vmem:[%s1288_s16 + $0x1b0] sm:$0xff] %v349_v54 }
  0x4c   : > { %352 = vst [vmem:[%s1288_s16 + $0x1b8] sm:$0xff] %v351_v55 }
  0x4d   : > { %354 = vst [vmem:[%s1288_s16 + $0x1c0] sm:$0xff] %v353_v56 }
  0x4e   : > { %356 = vst [vmem:[%s1288_s16 + $0x1c8] sm:$0xff] %v355_v57 }
  0x4f   : > { %358 = vst [vmem:[%s1288_s16 + $0x1d0] sm:$0xff] %v357_v58 }
  0x50   : > { %360 = vst [vmem:[%s1288_s16 + $0x1d8] sm:$0xff] %v359_v59 }
  0x51   : > { %362 = vst [vmem:[%s1288_s16 + $0x1e0] sm:$0xff] %v361_v60 }
  0x52   : > { %364 = vst [vmem:[%s1288_s16 + $0x1e8] sm:$0xff] %v363_v61 }
  0x53   : > { %366 = vst [vmem:[%s1288_s16 + $0x1f0] sm:$0xff] %v365_v62 }
  0x54   : > { %368 = vst [vmem:[%s1288_s16 + $0x1f8] sm:$0xff] %v367_v63 }
  0x55 PF: > { %374 = sbr.rel (!%p1261_p5) target bundleno = 97 (0x61), region = 55  ;;  %s376_s17 = sand.u32 (%p1261_p5), 1, %s1181_s23  }
  0x56   : > { %s1065_s18 = sshll.u32 (%p1261_p5), %s1185_s24, 4  ;;  %s1043_s19 = sshll.u32 (%p1261_p5), %s376_s17, 6 }
  0x57   : > { %s381_s28 = scalar_lea.vmem (%p1261_p5), %s1620_s4, %s1065_s18  ;;  %s378_s29 = scalar_lea.vmem (%p1261_p5), [#allocation3], %s1043_s19 }
  0x58   : > { %v394_v0 = vld [vmem:[%s381_s28] sm:$0xff] (%p1261_p5)  ;;  %v396_v1 = vld [vmem:[%s381_s28 + $0x8] sm:$0xff] (%p1261_p5) }
  0x59   : > { %v398_v2 = vld [vmem:[%s381_s28 + $0x20] sm:$0xff] (%p1261_p5)  ;;  %395 = vst [vmem:[%s378_s29] sm:$0xff] (%p1261_p5), %v394_v0  ;;  %v400_v3 = vld [vmem:[%s381_s28 + $0x28] sm:$0xff] (%p1261_p5) }
  0x5a   : > { %397 = vst [vmem:[%s378_s29 + $0x8] sm:$0xff] %v396_v1  ;;  %v402_v4 = vld [vmem:[%s381_s28 + $0x40] sm:$0xff]  ;;  %v404_v5 = vld [vmem:[%s381_s28 + $0x48] sm:$0xff] }
  0x5b   : > { %399 = vst [vmem:[%s378_s29 + $0x10] sm:$0xff] %v398_v2  ;;  %v406_v6 = vld [vmem:[%s381_s28 + $0x60] sm:$0xff]  ;;  %v408_v7 = vld [vmem:[%s381_s28 + $0x68] sm:$0xff] }
  0x5c   : > { %401 = vst [vmem:[%s378_s29 + $0x18] sm:$0xff] %v400_v3 }
  0x5d   : > { %403 = vst [vmem:[%s378_s29 + $0x20] sm:$0xff] %v402_v4 }
  0x5e   : > { %405 = vst [vmem:[%s378_s29 + $0x28] sm:$0xff] %v404_v5 }
  0x5f   : > { %407 = vst [vmem:[%s378_s29 + $0x30] sm:$0xff] %v406_v6 }
  0x60   : > { %409 = vst [vmem:[%s378_s29 + $0x38] sm:$0xff] %v408_v7 }
  0x61 PF: > { %p1046_p10 = scmp.ge.s32.totalorder %s1185_s24, 1  ;;  %p423_p11 = scmp.lt.s32.totalorder %s1185_s24, 3 }
  0x63   : > { %p424_p12 = pnand %p1046_p10, %p423_p11 }
  0x64   : > { %s1425_s7 = sand.u32 (!%p424_p12), 1, %s1177_s22   ;;  %s1051_s20 = sshll.u32 (!%p424_p12), %s1243_s25, 1 }
  0x65   : > { %427 = sbr.rel (%p424_p12) target bundleno = 373 (0x175), region = 82  ;;  %s1047_s10 = sshll.u32 (!%p424_p12), %s1425_s7, 9 }
  0x66   : > { %s1428_s11 = scalar_lea.vmem (!%p424_p12), [#allocation2], %s1047_s10  ;;  %s1048_s12 = sshll.u32 (!%p424_p12), %s1425_s7, 6 }
  0x67   : > { %s439_s17 = scalar_lea.vmem (!%p424_p12), [#allocation3], %s1048_s12  ;;  %p486_p13 = scmp.lt.s32.totalorder (!%p424_p12), %s1051_s20, 3 }
  0x68   : > { %p479_p0 = scmp.lt.s32.totalorder (!%p424_p12), %s1243_s25, 1  ;;  %s1049_s13 = sshll.u32 (!%p424_p12), %s1425_s7, 3 }
  0x69   : > { %s1061_s14 = sshll.u32 (!%p424_p12), %s1243_s25, 3  ;;  %s915_s29 = scalar_lea.sflag (!%p424_p12), [#allocation5], %s1425_s7 }
  0x6a   : > { %v524_v8 = vld [vmem:[%s1428_s11 + $0xf0] sm:$0xff]  ;;  %v525_v10 = vld [vmem:[%s1428_s11 + $0xf8] sm:$0xff]  ;;  %v522_v12 = vld [vmem:[%s1428_s11 + $0xe0] sm:$0xff]  ;;  %vm646_vm0 = vcmask 261120   ;;  %s1633_s20 = smov (!%p486_p13, %s1051_s20), 3  ;;  %vm752_vm7 = vcmask 1040384  }
  0x6b   : > { %v556_v9 = vld [vmem:[%s1428_s11 + $0x1f0] sm:$0xff]  ;;  %558 = vmatpush.msra.mxu0 %v524_v8  ;;  %v557_v11 = vld [vmem:[%s1428_s11 + $0x1f8] sm:$0xff]  ;;  %v554_v13 = vld [vmem:[%s1428_s11 + $0x1e0] sm:$0xff]  ;;  %598 = vmatpush.msra.mxu2 %v525_v10  ;;  %s1052_s26 = sshll.u32 %s1633_s20, 3  ;;  %s925_s20 = scalar_lea.hbm %s1622_s6, %s1061_s14 }
  0x6c   : > { %578 = vmatpush.msra.mxu1 %v556_v9  ;;  %618 = vmatpush.msra.mxu3 %v557_v11  ;;  %v523_v14 = vld [vmem:[%s1428_s11 + $0xe8] sm:$0xff]  ;;  %v520_v16 = vld [vmem:[%s1428_s11 + $0xd0] sm:$0xff]  ;;  %v521_v18 = vld [vmem:[%s1428_s11 + $0xd8] sm:$0xff]  ;;  %s1552_s10 = scalar_lea.vmem %s1621_s5, %s1052_s26  ;;  %s929_s28 = sshll.u32 %s925_s20, 4  ;;  %s930_s28 = int_to_ptr.hbm [resolvable:$true] %s929_s28 }
  0x6d   : > { %v555_v15 = vld [vmem:[%s1428_s11 + $0x1e8] sm:$0xff]  ;;  %559 = vmatpush.msra.mxu0 %v522_v12  ;;  %v552_v17 = vld [vmem:[%s1428_s11 + $0x1d0] sm:$0xff]  ;;  %v553_v19 = vld [vmem:[%s1428_s11 + $0x1d8] sm:$0xff]  ;;  %599 = vmatpush.msra.mxu2 %v523_v14 }
  0x6e   : > { %579 = vmatpush.msra.mxu1 %v554_v13  ;;  %619 = vmatpush.msra.mxu3 %v555_v15  ;;  %v518_v20 = vld [vmem:[%s1428_s11 + $0xc0] sm:$0xff]  ;;  %v519_v22 = vld [vmem:[%s1428_s11 + $0xc8] sm:$0xff]  ;;  %v516_v24 = vld [vmem:[%s1428_s11 + $0xb0] sm:$0xff] }
  0x6f   : > { %v550_v21 = vld [vmem:[%s1428_s11 + $0x1c0] sm:$0xff]  ;;  %560 = vmatpush.msra.mxu0 %v520_v16  ;;  %v551_v23 = vld [vmem:[%s1428_s11 + $0x1c8] sm:$0xff]  ;;  %600 = vmatpush.msra.mxu2 %v521_v18  ;;  %v548_v25 = vld [vmem:[%s1428_s11 + $0x1b0] sm:$0xff] }
  0x70   : > { %580 = vmatpush.msra.mxu1 %v552_v17  ;;  %620 = vmatpush.msra.mxu3 %v553_v19  ;;  %v517_v26 = vld [vmem:[%s1428_s11 + $0xb8] sm:$0xff]  ;;  %v514_v28 = vld [vmem:[%s1428_s11 + $0xa0] sm:$0xff]  ;;  %v515_v30 = vld [vmem:[%s1428_s11 + $0xa8] sm:$0xff] }
  0x71   : > { %561 = vmatpush.msra.mxu0 %v518_v20  ;;  %v549_v27 = vld [vmem:[%s1428_s11 + $0x1b8] sm:$0xff]  ;;  %601 = vmatpush.msra.mxu2 %v519_v22  ;;  %v546_v29 = vld [vmem:[%s1428_s11 + $0x1a0] sm:$0xff]  ;;  %v547_v31 = vld [vmem:[%s1428_s11 + $0x1a8] sm:$0xff] }
  0x72   : > { %581 = vmatpush.msra.mxu1 %v550_v21  ;;  %621 = vmatpush.msra.mxu3 %v551_v23  ;;  %v512_v32 = vld [vmem:[%s1428_s11 + $0x90] sm:$0xff]  ;;  %v513_v34 = vld [vmem:[%s1428_s11 + $0x98] sm:$0xff]  ;;  %v510_v36 = vld [vmem:[%s1428_s11 + $0x80] sm:$0xff] }
  0x73   : > { %562 = vmatpush.msra.mxu0 %v516_v24  ;;  %602 = vmatpush.msra.mxu2 %v517_v26  ;;  %v544_v33 = vld [vmem:[%s1428_s11 + $0x190] sm:$0xff]  ;;  %v545_v35 = vld [vmem:[%s1428_s11 + $0x198] sm:$0xff]  ;;  %v542_v37 = vld [vmem:[%s1428_s11 + $0x180] sm:$0xff] }
  0x74   : > { %582 = vmatpush.msra.mxu1 %v548_v25  ;;  %622 = vmatpush.msra.mxu3 %v549_v27  ;;  %v511_v38 = vld [vmem:[%s1428_s11 + $0x88] sm:$0xff]  ;;  %v508_v40 = vld [vmem:[%s1428_s11 + $0x70] sm:$0xff]  ;;  %v509_v42 = vld [vmem:[%s1428_s11 + $0x78] sm:$0xff] }
  0x75   : > { %563 = vmatpush.msra.mxu0 %v514_v28  ;;  %603 = vmatpush.msra.mxu2 %v515_v30  ;;  %v543_v39 = vld [vmem:[%s1428_s11 + $0x188] sm:$0xff]  ;;  %v540_v41 = vld [vmem:[%s1428_s11 + $0x170] sm:$0xff]  ;;  %v541_v43 = vld [vmem:[%s1428_s11 + $0x178] sm:$0xff] }
  0x76   : > { %583 = vmatpush.msra.mxu1 %v546_v29  ;;  %623 = vmatpush.msra.mxu3 %v547_v31  ;;  %v506_v44 = vld [vmem:[%s1428_s11 + $0x60] sm:$0xff]  ;;  %v507_v46 = vld [vmem:[%s1428_s11 + $0x68] sm:$0xff]  ;;  %v504_v48 = vld [vmem:[%s1428_s11 + $0x50] sm:$0xff] }
  0x77   : > { %564 = vmatpush.msra.mxu0 %v512_v32  ;;  %604 = vmatpush.msra.mxu2 %v513_v34  ;;  %v538_v45 = vld [vmem:[%s1428_s11 + $0x160] sm:$0xff]  ;;  %v539_v47 = vld [vmem:[%s1428_s11 + $0x168] sm:$0xff]  ;;  %v536_v49 = vld [vmem:[%s1428_s11 + $0x150] sm:$0xff] }
  0x78   : > { %584 = vmatpush.msra.mxu1 %v544_v33  ;;  %624 = vmatpush.msra.mxu3 %v545_v35  ;;  %v505_v50 = vld [vmem:[%s1428_s11 + $0x58] sm:$0xff]  ;;  %v502_v52 = vld [vmem:[%s1428_s11 + $0x40] sm:$0xff]  ;;  %v503_v54 = vld [vmem:[%s1428_s11 + $0x48] sm:$0xff] }
  0x79   : > { %565 = vmatpush.msra.mxu0 %v510_v36  ;;  %605 = vmatpush.msra.mxu2 %v511_v38  ;;  %v537_v51 = vld [vmem:[%s1428_s11 + $0x158] sm:$0xff]  ;;  %v534_v53 = vld [vmem:[%s1428_s11 + $0x140] sm:$0xff]  ;;  %v535_v55 = vld [vmem:[%s1428_s11 + $0x148] sm:$0xff] }
  0x7a   : > { %585 = vmatpush.msra.mxu1 %v542_v37  ;;  %625 = vmatpush.msra.mxu3 %v543_v39  ;;  %v500_v56 = vld [vmem:[%s1428_s11 + $0x30] sm:$0xff]  ;;  %v501_v58 = vld [vmem:[%s1428_s11 + $0x38] sm:$0xff]  ;;  %v498_v60 = vld [vmem:[%s1428_s11 + $0x20] sm:$0xff] }
  0x7b   : > { %566 = vmatpush.msra.mxu0 %v508_v40  ;;  %606 = vmatpush.msra.mxu2 %v509_v42  ;;  %v532_v57 = vld [vmem:[%s1428_s11 + $0x130] sm:$0xff]  ;;  %v533_v59 = vld [vmem:[%s1428_s11 + $0x138] sm:$0xff]  ;;  %v530_v61 = vld [vmem:[%s1428_s11 + $0x120] sm:$0xff] }
  0x7c   : > { %586 = vmatpush.msra.mxu1 %v540_v41  ;;  %626 = vmatpush.msra.mxu3 %v541_v43  ;;  %v499_v62 = vld [vmem:[%s1428_s11 + $0x28] sm:$0xff]  ;;  %v496_v0 = vld [vmem:[%s1428_s11 + $0x10] sm:$0xff]  ;;  %v497_v2 = vld [vmem:[%s1428_s11 + $0x18] sm:$0xff] }
  0x7d   : > { %567 = vmatpush.msra.mxu0 %v506_v44  ;;  %607 = vmatpush.msra.mxu2 %v507_v46  ;;  %v531_v63 = vld [vmem:[%s1428_s11 + $0x128] sm:$0xff]  ;;  %v528_v1 = vld [vmem:[%s1428_s11 + $0x110] sm:$0xff]  ;;  %v529_v3 = vld [vmem:[%s1428_s11 + $0x118] sm:$0xff] }
  0x7e   : > { %587 = vmatpush.msra.mxu1 %v538_v45  ;;  %627 = vmatpush.msra.mxu3 %v539_v47  ;;  %v494_v4 = vld [vmem:[%s1428_s11] sm:$0xff]  ;;  %v495_v6 = vld [vmem:[%s1428_s11 + $0x8] sm:$0xff]  ;;  %v645_v10 = vld [vmem:[%s439_s17 + $0x38] sm:$0xff] }
  0x7f   : > { %568 = vmatpush.msra.mxu0 %v504_v48  ;;  %608 = vmatpush.msra.mxu2 %v505_v50  ;;  %v526_v5 = vld [vmem:[%s1428_s11 + $0x100] sm:$0xff]  ;;  %v527_v7 = vld [vmem:[%s1428_s11 + $0x108] sm:$0xff]  ;;  %v644_v11 = vld [vmem:[%s439_s17 + $0x30] sm:$0xff]  ;;  %s480_s11 = scalar_select %p479_p0, %s1243_s25, 1 }
  0x80   : > { %588 = vmatpush.msra.mxu1 %v536_v49  ;;  %628 = vmatpush.msra.mxu3 %v537_v51  ;;  %v491_v8 = vld [vmem:[%s1616_s0] sm:$0xff]  ;;  %v492_v9 = vld [vmem:[%s1616_s0 + $0x8] sm:$0xff]  ;;  %v641_v14 = vld [vmem:[%s439_s17 + $0x18] sm:$0xff]  ;;  %s478_s25 = scalar_lea.vmem [#allocation4], %s1049_s13  ;;  %s1143_s13 = scalar_lea.hbm %s1622_s6, 16 }
  0x81   : > { %569 = vmatpush.msra.mxu0 %v502_v52  ;;  %609 = vmatpush.msra.mxu2 %v503_v54  ;;  %v643_v12 = vld [vmem:[%s439_s17 + $0x28] sm:$0xff]  ;;  %v642_v13 = vld [vmem:[%s439_s17 + $0x20] sm:$0xff]  ;;  %v640_v15 = vld [vmem:[%s439_s17 + $0x10] sm:$0xff]  ;;  %s1050_s12 = sshll.u32 %s480_s11, 3  ;;  %s927_s26 = sshll.u32 %s478_s25, 4  ;;  %s928_s26 = int_to_ptr.vmem [resolvable:$true] %s927_s26 }
  0x82   : > { %589 = vmatpush.msra.mxu1 %v534_v53  ;;  %629 = vmatpush.msra.mxu3 %v535_v55  ;;  %v639_v16 = vld [vmem:[%s439_s17 + $0x8] sm:$0xff]  ;;  %v638_v17 = vld [vmem:[%s439_s17] sm:$0xff]  ;;  %s482_s17 = scalar_lea.vmem %s1617_s1, %s1050_s12 }
  0x83   : > { %570 = vmatpush.msra.mxu0 %v500_v56  ;;  %610 = vmatpush.msra.mxu2 %v501_v58  ;;  %v493_v18 = vld [vmem:[%s1618_s2] sm:$0xff] }
  0x84   : > { %590 = vmatpush.msra.mxu1 %v532_v57  ;;  %630 = vmatpush.msra.mxu3 %v533_v59 }
  0x85   : > { %571 = vmatpush.msra.mxu0 %v498_v60  ;;  %611 = vmatpush.msra.mxu2 %v499_v62 }
  0x86   : > { %591 = vmatpush.msra.mxu1 %v530_v61  ;;  %631 = vmatpush.msra.mxu3 %v531_v63 }
  0x87   : > { %572 = vmatpush.msra.mxu0 %v496_v0  ;;  %612 = vmatpush.msra.mxu2 %v497_v2 }
  0x88   : > { %592 = vmatpush.msra.mxu1 %v528_v1  ;;  %632 = vmatpush.msra.mxu3 %v529_v3 }
  0x89   : > { %573 = vmatpush.msra.mxu0 %v494_v4  ;;  %613 = vmatpush.msra.mxu2 %v495_v6 }
  0x8a   : > { %593 = vmatpush.msra.mxu1 %v526_v5  ;;  %633 = vmatpush.msra.mxu3 %v527_v7 }
  0x8b   : > { %574 = vmatmul.f32.vlgmr.msra.gmra.mxu0 %v491_v8  ;;  %594 = vmatmul.f32.vlgmr.msra.gmra.mxu1 %v492_v9 }
  0x8c   : > { %614 = vmatmul.f32.vlgmr.msra.gmra.mxu2 %v491_v8  ;;  %634 = vmatmul.f32.vlgmr.msra.gmra.mxu3 %v492_v9 }
  0x8d   : > { %682 = vmatpush.msrb.mxu1 %v645_v10  ;;  %662 = vmatpush.msrb.mxu0 %v644_v11 }
  0x8f   : > { %683 = vmatpush.msrb.mxu1 %v643_v12  ;;  %663 = vmatpush.msrb.mxu0 %v642_v13 }
  0x91   : > { %684 = vmatpush.msrb.mxu1 %v641_v14  ;;  %664 = vmatpush.msrb.mxu0 %v640_v15 }
  0x93   : > { %685 = vmatpush.msrb.mxu1 %v639_v16  ;;  %665 = vmatpush.msrb.mxu0 %v638_v17 }
  0x94   : > { %1053 = vmatmul.msk.f32.vlgmr.msrb.gmra.mxu0 %vm646_vm0, %v493_v18  ;;  %1054 = vmatmul.msk.f32.vlgmr.msrb.gmra.mxu1 %vm646_vm0, %v493_v18 }
 0x108   : > { %v575_v19 = vpop.f32.mrf.mxu0  ;;  %v595_v20 = vpop.f32.mrf.mxu1 }
 0x109   : > { %v1504_v21 = vadd.f32 %v595_v20, %v575_v19 }
 0x10b   : > { %v693_v22 = vrot.slane %v1504_v21, 4  ;;  %v705_v23 = vmul.f32 %v1504_v21, %v1504_v21 }
 0x10d   : > { %v694_v24 = vadd.f32 %v693_v22, %v1504_v21  ;;  %v707_v25 = vrot.slane %v705_v23, 4 }
 0x10f   : > { %v695_v26 = vrot.slane %v694_v24, 2  ;;  %v708_v27 = vadd.f32 %v707_v25, %v705_v23  ;;  %v615_v28 = vpop.f32.mrf.mxu2  ;;  %v635_v29 = vpop.f32.mrf.mxu3 }
 0x110   : > { %v1510_v30 = vadd.f32 %v635_v29, %v615_v28 }
 0x111   : > { %v696_v31 = vadd.f32 %v695_v26, %v694_v24  ;;  %v709_v32 = vrot.slane %v708_v27, 2  ;;  %v1512_v33 = vpop.f32.mrf.mxu0  ;;  %v1514_v34 = vpop.f32.mrf.mxu1 }
 0x112   : > { %v699_v35 = vrot.slane %v1510_v30, 4  ;;  %v706_v36 = vmul.f32 %v1510_v30, %v1510_v30  ;;  %v782_v37 = vrot.slane %v1512_v33, 4  ;;  %v794_v38 = vmul.f32 %v1512_v33, %v1512_v33 }
 0x113   : > { %v697_v39 = vrot.slane %v696_v31, 1  ;;  %v710_v40 = vadd.f32 %v709_v32, %v708_v27  ;;  %v788_v41 = vrot.slane %v1514_v34, 4  ;;  %v795_v42 = vmul.f32 %v1514_v34, %v1514_v34 }
 0x114   : > { %v700_v43 = vadd.f32 %v699_v35, %v1510_v30  ;;  %v713_v44 = vrot.slane %v706_v36, 4  ;;  %v783_v45 = vadd.f32 %v782_v37, %v1512_v33  ;;  %v796_v46 = vrot.slane %v794_v38, 4 }
 0x115   : > { %v698_v47 = vadd.f32 %v697_v39, %v696_v31  ;;  %v711_v48 = vrot.slane %v710_v40, 1  ;;  %v789_v49 = vadd.f32 %v788_v41, %v1514_v34  ;;  %v802_v50 = vrot.slane %v795_v42, 4 }
 0x116   : > { %v701_v51 = vrot.slane %v700_v43, 2  ;;  %v714_v52 = vadd.f32 %v713_v44, %v706_v36  ;;  %v784_v53 = vrot.slane %v783_v45, 2  ;;  %v797_v54 = vadd.f32 %v796_v46, %v794_v38 }
 0x117   : > { %v712_v55 = vadd.f32 %v711_v48, %v710_v40  ;;  %v1528_v56 = vmul.f32 0.125, %v698_v47  ;;  %v790_v57 = vrot.slane %v789_v49, 2  ;;  %v803_v58 = vadd.f32 %v802_v50, %v795_v42 }
 0x118   : > { %v702_v59 = vadd.f32 %v701_v51, %v700_v43  ;;  %v715_v60 = vrot.slane %v714_v52, 2  ;;  %v785_v61 = vadd.f32 %v784_v53, %v783_v45  ;;  %v798_v0 = vrot.slane %v797_v54, 2 }
 0x119   : > { %v721_v62 = vmul.f32 0.125, %v712_v55  ;;  %v723_v63 = vmul.f32 %v1528_v56, %v1528_v56  ;;  %v791_v1 = vadd.f32 %v790_v57, %v789_v49  ;;  %v804_v5 = vrot.slane %v803_v58, 2 }
 0x11a   : > { %v703_v2 = vrot.slane %v702_v59, 1  ;;  %v716_v3 = vadd.f32 %v715_v60, %v714_v52  ;;  %v786_v4 = vrot.slane %v785_v61, 1  ;;  %v799_v7 = vadd.f32 %v798_v0, %v797_v54 }
 0x11b   : > { %v725_v6 = vsub.f32 %v721_v62, %v723_v63  ;;  %v792_v8 = vrot.slane %v791_v1, 1  ;;  %v805_v12 = vadd.f32 %v804_v5, %v803_v58  ;;  %v690_v63 = vld [vmem:[%s1552_s10] ss:$8 sm:$0x3] }
 0x11c   : > { %v704_v9 = vadd.f32 %v703_v2, %v702_v59  ;;  %v717_v10 = vrot.slane %v716_v3, 1  ;;  %v787_v11 = vadd.f32 %v786_v4, %v785_v61  ;;  %v800_v14 = vrot.slane %v799_v7, 1 }
 0x11d   : > { %v1532_v13 = vadd.f32 1e-05, %v725_v6  ;;  %v793_v15 = vadd.f32 %v792_v8, %v791_v1  ;;  %v806_v19 = vrot.slane %v805_v12, 1 }
 0x11e   : > { %v718_v16 = vadd.f32 %v717_v10, %v716_v3  ;;  %v1534_v17 = vmul.f32 0.125, %v704_v9  ;;  %v1536_v18 = vmul.f32 0.125, %v787_v11  ;;  %v801_v20 = vadd.f32 %v800_v14, %v799_v7  ;;  %v1056_v7 = vld [vmem:[%s1552_s10 + $0x2] ss:$8 sm:$0x3] }
 0x11f   : > { %1105 = vrsqrt.f32 %v1532_v13  ;;  %v1539_v22 = vmul.f32 0.125, %v793_v15  ;;  %v807_v26 = vadd.f32 %v806_v19, %v805_v12  ;;  %vm735_vm6 = vweird.f32 %v1532_v13 }
 0x120   : > { %v722_v23 = vmul.f32 0.125, %v718_v16  ;;  %v724_v24 = vmul.f32 %v1534_v17, %v1534_v17  ;;  %v812_v25 = vmul.f32 %v1536_v18, %v1536_v18  ;;  %v810_v27 = vmul.f32 0.125, %v801_v20 }
 0x121   : > { %v813_v28 = vmul.f32 %v1539_v22, %v1539_v22  ;;  %v811_v31 = vmul.f32 0.125, %v807_v26 }
 0x122   : > { %v726_v29 = vsub.f32 %v722_v23, %v724_v24  ;;  %v814_v32 = vsub.f32 %v810_v27, %v812_v25  ;;  %v1055_v23 = vld [vmem:[%s1552_s10 + $0x1] ss:$8 sm:$0x3]  ;;  %v1057_v27 = vld [vmem:[%s1552_s10 + $0x3] ss:$8 sm:$0x3] }
 0x123   : > { %v815_v36 = vsub.f32 %v811_v31, %v813_v28  ;;  %s1137_s10 = sshra.s32 %s930_s28, 4  ;;  %s1138_s10 = int_to_ptr.hbm [resolvable:$true] %s1137_s10 }
 0x124   : > { %v728_v35 = vadd.f32 1e-05, %v726_v29  ;;  %v816_v38 = vadd.f32 1e-05, %v814_v32  ;;  %s1139_s11 = scalar_lea.hbm %s1138_s10, 8  ;;  %p1144_p4 = scmp.lt.s32.totalorder %s1138_s10, %s1622_s6 }
 0x125   : > { %v1106_v37 = vpop.eup %1105  ;;  %v817_v40 = vadd.f32 1e-05, %v815_v36  ;;  %p1140_p1 = scmp.ne.s32.totalorder %s1138_s10, %s1139_s11  ;;  %p1145_p5 = scmp.lt.s32.totalorder %s1143_s13, %s1139_s11 }
 0x126   : > { %v730_v39 = vmul.f32 %v1106_v37, %v1532_v13  ;;  %1107 = vrsqrt.f32 %v728_v35  ;;  %vm736_vm2 = vweird.f32 %v1106_v37  ;;  %vm745_vm3 = vweird.f32 %v728_v35 }
 0x127   : > { %1109 = vrsqrt.f32 %v816_v38  ;;  %vm834_vm8 = vweird.f32 %v817_v40  ;;  %vm737_vm9 = vmor %vm735_vm6, %vm736_vm2  ;;  %vm824_vm12 = vweird.f32 %v816_v38  ;;  %p1141_p2 = pnand %p1140_p1, %p1265_p6  ;;  %p1146_p7 = por %p1145_p5, %p1144_p4 }
 0x128   : > { %v731_v41 = vmul.f32 %v1106_v37, %v730_v39  ;;  %1111 = vrsqrt.f32 %v817_v40 }
 0x129   : > { %p1142_p3 = pneg %p1141_p2 }
 0x12a   : > { %v732_v44 = vmul.f32 0.5, %v731_v41 }
 0x12b   : > { %p1147_p10 = pnand %p1146_p7, %p1142_p3 }
 0x12c   : > { %v1108_v42 = vpop.eup %1107  ;;  %v733_v51 = vsub.f32 1.5, %v732_v44 }
 0x12d   : > { %v1110_v43 = vpop.eup %1109  ;;  %v740_v45 = vmul.f32 %v1108_v42, %v728_v35  ;;  %vm746_vm1 = vweird.f32 %v1108_v42 }
 0x12e   : > { %v819_v46 = vmul.f32 %v1110_v43, %v816_v38  ;;  %v1112_v47 = vpop.eup %1111  ;;  %v734_v59 = vmul.f32 %v1106_v37, %v733_v51  ;;  %vm747_vm4 = vmor %vm745_vm3, %vm746_vm1  ;;  %vm825_vm10 = vweird.f32 %v1110_v43 }
 0x12f   : > { %v741_v48 = vmul.f32 %v1108_v42, %v740_v45  ;;  %v829_v50 = vmul.f32 %v1112_v47, %v817_v40  ;;  %vm835_vm5 = vweird.f32 %v1112_v47  ;;  %vm826_vm13 = vmor %vm824_vm12, %vm825_vm10 }
 0x130   : > { %v820_v49 = vmul.f32 %v1110_v43, %v819_v46  ;;  %v738_v3 = vsel %vm737_vm9, %v1106_v37, %v734_v59  ;;  %vm836_vm11 = vmor %vm834_vm8, %vm835_vm5 }
 0x131   : > { %v742_v52 = vmul.f32 0.5, %v741_v48  ;;  %v830_v54 = vmul.f32 %v1112_v47, %v829_v50 }
 0x132   : > { %v821_v53 = vmul.f32 0.5, %v820_v49 }
 0x133   : > { %v743_v55 = vsub.f32 1.5, %v742_v52  ;;  %v831_v58 = vmul.f32 0.5, %v830_v54 }
 0x134   : > { %v822_v57 = vsub.f32 1.5, %v821_v53 }
 0x135   : > { %v744_v60 = vmul.f32 %v1108_v42, %v743_v55  ;;  %v832_v61 = vsub.f32 1.5, %v831_v58 }
 0x136   : > { %v823_v1 = vmul.f32 %v1110_v43, %v822_v57 }
 0x137   : > { %v748_v62 = vsel %vm747_vm4, %v1108_v42, %v744_v60  ;;  %v833_v2 = vmul.f32 %v1112_v47, %v832_v61 }
 0x138   : > { %v751_v0 = vrot.slane %v748_v62, 7  ;;  %v827_v9 = vsel %vm826_vm13, %v1110_v43, %v823_v1 }
 0x139   : > { %v837_v5 = vsel %vm836_vm11, %v1112_v47, %v833_v2 }
 0x13a   : > { %v753_v4 = vsel %vm752_vm7, %v738_v3, %v751_v0  ;;  %v840_v8 = vrot.slane %v837_v5, 7 }
 0x13b   : > { %v755_v6 = vmul.f32 %v753_v4, %v690_v63 }
 0x13c   : > { %v841_v12 = vsel %vm752_vm7, %v827_v9, %v840_v8 }
 0x13d   : > { %v757_v10 = vperm.slane %v755_v6, 0  ;;  %v758_v11 = vperm.slane %v755_v6, 1  ;;  %v843_v13 = vmul.f32 %v1056_v7, %v841_v12  ;;  %v908_v6 = vld [vmem:[%s482_s17] sm:$0xff] }
 0x13f   : > { %v762_v14 = vmul.f32 %v758_v11, %v1534_v17  ;;  %v845_v15 = vperm.slane %v843_v13, 0  ;;  %v846_v16 = vperm.slane %v843_v13, 1  ;;  %v761_v19 = vmul.f32 %v757_v10, %v1528_v56 }
 0x140   : > { %v770_v17 = vmul.f32 %v758_v11, %v1510_v30 }
 0x141   : > { %v765_v20 = vrot.slane %v762_v14, 7  ;;  %v850_v24 = vmul.f32 %v846_v16, %v1539_v22  ;;  %v849_v28 = vmul.f32 %v845_v15, %v1536_v18  ;;  %v857_v36 = vmul.f32 %v845_v15, %v1512_v33 }
 0x142   : > { %v858_v37 = vmul.f32 %v846_v16, %v1514_v34  ;;  %v769_v34 = vmul.f32 %v757_v10, %v1504_v21 }
 0x143   : > { %v766_v25 = vsel %vm752_vm7, %v761_v19, %v765_v20  ;;  %v853_v29 = vrot.slane %v850_v24, 7 }
 0x144   : > { %v768_v26 = vsub.f32 %v1055_v23, %v766_v25 }
 0x145   : > { %v854_v32 = vsel %vm752_vm7, %v849_v28, %v853_v29 }
 0x146   : > { %v773_v31 = vperm.slane %v768_v26, 1  ;;  %v856_v35 = vsub.f32 %v1057_v27, %v854_v32  ;;  %v772_v33 = vperm.slane %v768_v26, 0 }
 0x148   : > { %v777_v56 = vadd.f32 %v773_v31, %v770_v17  ;;  %v860_v38 = vperm.slane %v856_v35, 0  ;;  %v861_v22 = vperm.slane %v856_v35, 1  ;;  %v776_v47 = vadd.f32 %v772_v33, %v769_v34 }
 0x14a   : > { %v864_v39 = vadd.f32 %v860_v38, %v857_v36  ;;  %v865_v40 = vadd.f32 %v861_v22, %v858_v37 }
 0x14c   : > { %v868_v41 = vadd.f32 %v865_v40, %v777_v56  ;;  %v1059_v42 = vmul.f32 -1.442695, %v864_v39  ;;  %v866_v52 = vadd.f32 %v864_v39, %v776_v47 }
 0x14e   : > { %v1058_v18 = vmul.f32 -1.442695, %v868_v41  ;;  %1113 = vpow2.f32 %v1059_v42 }
 0x150   : > { %1115 = vpow2.f32 %v1058_v18 }
 0x154   : > { %v1114_v43 = vpop.eup %1113 }
 0x155   : > { %v891_v44 = vadd.f32 1.0, %v1114_v43 }
 0x156   : > { %v1116_v30 = vpop.eup %1115 }
 0x157   : > { %v872_v45 = vadd.f32 1.0, %v1116_v30  ;;  %1117 = vrcp.f32 %v891_v44  ;;  %vm897_vm15 = vweird.f32 %v891_v44  ;;  %v901_v57 = vand.u32 2147483647, %v891_v44 }
 0x158   : > { %v903_v58 = vand.u32 2147483648, %v891_v44 }
 0x159   : > { %1119 = vrcp.f32 %v872_v45  ;;  %v884_v55 = vand.u32 2147483648, %v872_v45  ;;  %v882_v21 = vand.u32 2147483647, %v872_v45  ;;  %vm878_vm2 = vweird.f32 %v872_v45 }
 0x15a   : > { %1121 = vtanh.f32 %v866_v52  ;;  %v904_v1 = vor.u32 1.1754944e-38, %v903_v58  ;;  %vm902_vm5 = vcmp.eq.f32.partialorder %v901_v57, 8.507059e+37 }
 0x15b   : > { %v885_v0 = vor.u32 1.1754944e-38, %v884_v55  ;;  %vm883_vm4 = vcmp.eq.f32.partialorder %v882_v21, 8.507059e+37 }
 0x15d   : > { %v1118_v46 = vpop.eup %1117 }
 0x15e   : > { %v893_v48 = vmul.f32 %v1118_v46, %v891_v44  ;;  %vm898_vm14 = vweird.f32 %v1118_v46 }
 0x15f   : > { %v1120_v49 = vpop.eup %1119  ;;  %vm1573_vm1 = vmor %vm897_vm15, %vm898_vm14 }
 0x160   : > { %v874_v50 = vmul.f32 %v1120_v49, %v872_v45  ;;  %v894_v51 = vsub.f32 1.0, %v893_v48  ;;  %vm879_vm0 = vweird.f32 %v1120_v49  ;;  %v1122_v8 = vpop.eup %1121 }
 0x161   : > { %vm880_vm3 = vmor %vm878_vm2, %vm879_vm0 }
 0x162   : > { %v875_v53 = vsub.f32 1.0, %v874_v50  ;;  %v895_v54 = vmul.f32 %v1118_v46, %v894_v51 }
 0x164   : > { %v876_v59 = vmul.f32 %v1120_v49, %v875_v53  ;;  %v896_v60 = vadd.f32 %v1118_v46, %v895_v54 }
 0x166   : > { %v877_v62 = vadd.f32 %v1120_v49, %v876_v59  ;;  %v900_v63 = vsel %vm1573_vm1, %v1118_v46, %v896_v60 }
 0x167   : > { %v905_v4 = vsel %vm902_vm5, %v904_v1, %v900_v63 }
 0x168   : > { %v881_v2 = vsel %vm880_vm3, %v1120_v49, %v877_v62 }
 0x169   : > { %v886_v3 = vsel %vm883_vm4, %v885_v0, %v881_v2 }
 0x16a   : > { %v907_v5 = vmul.f32 %v905_v4, %v886_v3 }
 0x16c   : > { %v909_v7 = vsub.f32 1.0, %v907_v5  ;;  %v911_v10 = vmul.f32 %v1122_v8, %v907_v5 }
 0x16e   : > { %v910_v9 = vmul.f32 %v909_v7, %v908_v6 }
 0x170   : > { %v912_v11 = vadd.f32 %v911_v10, %v910_v9 }
 0x172   : > { %913 = vst [vmem:[%s478_s25] sm:$0xff] %v912_v11 }
 0x173   : > { %1150 = shalt.err (!%p1147_p10)
}
 0x174   : > { %1066 = dma.vmem_to_hbm [thread:$0]  (%p1265_p6), %s928_s26, 128, %s930_s28, %s915_s29  }
 0x175 PF: > { %s941_s7 = sand.u32 1, %s1173_s21   ;;  %p1069_p11 = pnand %p1039_p9, %p1269_p8 }
 0x176   : > { %s942_s17 = scalar_lea.sflag [#allocation5], %s941_s7 }
 0x177   : > { %p1070_p12 = pneg %p1069_p11 }
 0x179   : > { %1168 = dma.done.wait (%p1070_p12), %s942_s17, 128  }
 0x17a   : > { %1170 = vsyncadd (%p1070_p12), %s942_s17, 4294967168  ;;  %p16_p13 = scmp.ge.s32.totalorder %s1247_s27, 4   ;;  %s1628_s21 = smov %s1177_s22 }
 0x17b   : > { %s1629_s22 = smov %s1181_s23  ;;  %s1630_s23 = smov %s1259_s30 }
 0x17c   : > { %s1631_s24 = smov %s1247_s27  ;;  %18 = sbr.rel (!%p16_p13) target bundleno = 3 (0x3), region = 147 }
 0x181   :  { %948 = vsyncpa [#allocation5], 1 }
 0x182   :  { %950 = vsyncpa [#allocation5 + $0x1], 1 }

</bundles_post_ra>
